<compile_context>
chip_gen: v5e
topology: v5e:2x2
jax: 0.10.0
libtpu: 0.0.40
codegen_flags: <defaults>
</compile_context>

<pallas_src>
import functools

import jax
import jax.numpy as jnp
from jax.experimental import pallas as pl
from jax.experimental.pallas import tpu as pltpu

LANE = 128
_MIB = 1 << 20


def _round_up(x, m):
    return (x + m - 1) // m * m


def _largest_tile(n_pad, limit):
    """Largest multiple of 128 that divides n_pad and is <= limit (min 128)."""
    best = LANE
    t = LANE
    while t <= limit:
        if n_pad % t == 0:
            best = t
        t += LANE
    return best


# ----------------------------- Pallas kernel --------------------------------
# One adjacency sweep:  out = act(A_hat @ XW + b)   with XW precomputed.
#   grid = (n_pad // TM, n_pad // TK)
#   axis 0 (output row tiles)   -> "parallel"  (megacore shardable on v7x)
#   axis 1 (A_hat reduction, K) -> "arbitrary" (f32 VMEM accumulator)
# MXU operands are bf16; accumulation, bias add and activation are f32.

def _adj_spmm_kernel(adj_ref, xw_ref, b_ref, o_ref, acc_ref, *,
                     apply_relu, xw_resident, tk):
    k = pl.program_id(1)

    @pl.when(k == 0)
    def _init():
        acc_ref[...] = jnp.zeros_like(acc_ref)

    if xw_resident:
        # XW lives fully in VMEM; take the K-tile rows for this grid step.
        kk = pl.multiple_of(k * tk, tk)
        xw = xw_ref[pl.ds(kk, tk), :]
    else:
        xw = xw_ref[...]

    acc_ref[...] += jnp.dot(adj_ref[...], xw,
                            preferred_element_type=jnp.float32)

    @pl.when(k == pl.num_programs(1) - 1)
    def _finalize():
        y = acc_ref[...] + b_ref[...]
        if apply_relu:
            y = jnp.maximum(y, 0.0)
        o_ref[...] = y.astype(o_ref.dtype)


def _adj_spmm(adj, xw, b, *, apply_relu, out_dtype, tm, tk,
              xw_resident_budget_bytes=8 * _MIB):
    """Tiled  act(A_hat @ XW + b)  via pallas_call (XW already projected)."""
    n_pad = adj.shape[0]
    fout = xw.shape[1]
    assert n_pad % tm == 0 and n_pad % tk == 0
    assert fout % LANE == 0, "pad the feature dim to 128 lanes"

    xw_bytes = n_pad * fout * xw.dtype.itemsize
    xw_resident = xw_bytes <= xw_resident_budget_bytes

    if xw_resident:
        xw_spec = pl.BlockSpec((n_pad, fout), lambda i, k: (0, 0))
    else:
        xw_spec = pl.BlockSpec((tk, fout), lambda i, k: (k, 0))

    kernel = functools.partial(_adj_spmm_kernel, apply_relu=apply_relu,
                               xw_resident=xw_resident, tk=tk)

    # Rough VMEM estimate: double-buffered adj & out tiles + XW + acc + bias.
    vmem_est = (2 * tm * tk * adj.dtype.itemsize
                + (xw_bytes if xw_resident
                   else 2 * tk * fout * xw.dtype.itemsize)
                + 2 * tm * fout * jnp.dtype(out_dtype).itemsize
                + tm * fout * 4 + fout * 4)
    compiler_kwargs = dict(dimension_semantics=("parallel", "arbitrary"))
    if vmem_est > 12 * _MIB:
        # Exceeds the smallest per-generation scoped default (16 MiB on v5e);
        # raise explicitly with headroom.  Stays well under v7x's 64 MiB.
        compiler_kwargs["vmem_limit_bytes"] = int(vmem_est * 5 // 4)

    return pl.pallas_call(
        kernel,
        out_shape=jax.ShapeDtypeStruct((n_pad, fout), out_dtype),
        grid_spec=pltpu.PrefetchScalarGridSpec(
            num_scalar_prefetch=0,
            grid=(n_pad // tm, n_pad // tk),
            in_specs=[
                pl.BlockSpec((tm, tk), lambda i, k: (i, k)),    # A_hat tile
                xw_spec,                                        # XW (resident or streamed)
                pl.BlockSpec((1, fout), lambda i, k: (0, 0)),   # bias
            ],
            out_specs=pl.BlockSpec((tm, fout), lambda i, k: (i, 0)),
            scratch_shapes=[pltpu.VMEM((tm, fout), jnp.float32)],
        ),
        compiler_params=pltpu.CompilerParams(**compiler_kwargs),
    )(adj, xw, b)


# ------------------------------ JAX wrapper ----------------------------------

def build_norm_adj(edge_index, edge_weight, num_nodes, *, n_pad=None,
                   dtype=jnp.float32):
    """Dense D^{-1/2} (A + I) D^{-1/2} (PyG gcn_norm), built directly padded."""
    if n_pad is None:
        n_pad = num_nodes
    if edge_weight is None:
        edge_weight = jnp.ones((edge_index.shape[1],), dtype=jnp.float32)
    loop_idx = jnp.arange(num_nodes, dtype=edge_index.dtype)
    row = jnp.concatenate([edge_index[0], loop_idx])
    col = jnp.concatenate([edge_index[1], loop_idx])
    w = jnp.concatenate([edge_weight,
                         jnp.ones((num_nodes,), dtype=jnp.float32)])
    deg = jnp.zeros((num_nodes,), jnp.float32).at[col].add(w)
    dis = jnp.where(deg > 0, 1.0 / jnp.sqrt(deg), 0.0)
    norm = dis[row] * w * dis[col]
    # message j(row) -> i(col): A_hat[i, j] = norm; scatter straight into the
    # padded buffer and cast once (no extra N x N intermediate).
    adj = jnp.zeros((n_pad, n_pad), jnp.float32).at[col, row].add(norm)
    return adj.astype(dtype)


def variational_gcn_encoder(x, edge_index, params, edge_weight=None):
    n, in_c = x.shape
    hid = params["w1"].shape[1]          # 2 * out_channels
    out_c = params["wmu"].shape[1]

    # Pad N so the row axis always has >= 2 tiles (both v7x TensorCores get
    # work) and every tile is a multiple of the (8, 128) vreg tiling.
    n_pad = _round_up(n, 2 * LANE)
    tm = _largest_tile(n_pad, min(512, n_pad // 2))
    tk = _largest_tile(n_pad, min(512, n_pad))

    hid_pad = _round_up(hid, LANE)
    head_pad = _round_up(2 * out_c, LANE)

    # Dense normalized adjacency, padded, bf16 for the MXU.
    # TODO(synk): for large sparse graphs keep A_hat implicit (CSR row-block
    # gathers via scalar prefetch + manual DMA) instead of the dense O(N^2)
    # stream, and/or quantize A_hat to int8 (v5e/v6e) / fp8 (v7x) to halve
    # the dominant HBM stream.
    adj_p = build_norm_adj(edge_index, edge_weight, n, n_pad=n_pad,
                           dtype=jnp.bfloat16)

    # ---- Hoisted narrow projections (computed once per layer, f32 -> bf16) --
    x_p = jnp.zeros((n_pad, in_c), jnp.float32).at[:n].set(
        x.astype(jnp.float32))
    w1_p = jnp.zeros((in_c, hid_pad), jnp.float32).at[:, :hid].set(
        params["w1"])
    xw1 = jnp.dot(x_p, w1_p,
                  preferred_element_type=jnp.float32).astype(jnp.bfloat16)
    b1_p = jnp.zeros((1, hid_pad), jnp.float32).at[:, :hid].set(params["b1"])

    # Layer 1: h = relu(A_hat @ (X @ W1) + b1); bf16 between the two sweeps.
    h = _adj_spmm(adj_p, xw1, b1_p, apply_relu=True,
                  out_dtype=jnp.bfloat16, tm=tm, tk=tk)

    # Fused mu/logstd heads: one sweep with Wcat = [Wmu | Wls].
    wcat = jnp.concatenate([params["wmu"], params["wls"]], axis=1)
    bcat = jnp.concatenate([params["bmu"], params["bls"]], axis=1)
    wcat_p = jnp.zeros((hid_pad, head_pad), jnp.float32).at[
        :hid, :2 * out_c].set(wcat)
    hw = jnp.dot(h.astype(jnp.float32), wcat_p,
                 preferred_element_type=jnp.float32).astype(jnp.bfloat16)
    bcat_p = jnp.zeros((1, head_pad), jnp.float32).at[:, :2 * out_c].set(bcat)

    y = _adj_spmm(adj_p, hw, bcat_p, apply_relu=False,
                  out_dtype=jnp.float32, tm=tm, tk=tk)

    mu = y[:n, :out_c]
    logstd = y[:n, out_c:2 * out_c]
    return mu, logstd


def init_params(key, in_channels, out_channels):
    """Deterministic glorot-style weights, zero biases (as in GCNConv)."""
    k1, k2, k3 = jax.random.split(key, 3)
    hid = 2 * out_channels

    def glorot(k, fan_in, fan_out):
        limit = jnp.sqrt(6.0 / (fan_in + fan_out))
        return jax.random.uniform(k, (fan_in, fan_out), jnp.float32,
                                  -limit, limit)

    return {
        "w1": glorot(k1, in_channels, hid),
        "b1": jnp.zeros((1, hid), jnp.float32),
        "wmu": glorot(k2, hid, out_channels),
        "bmu": jnp.zeros((1, out_channels), jnp.float32),
        "wls": glorot(k3, hid, out_channels),
        "bls": jnp.zeros((1, out_channels), jnp.float32),
    }


def _reference(x, adj, params):
    """Pure-JAX f32 reference of the module forward."""
    h = jnp.maximum(adj @ (x @ params["w1"]) + params["b1"], 0.0)
    mu = adj @ (h @ params["wmu"]) + params["bmu"]
    ls = adj @ (h @ params["wls"]) + params["bls"]
    return mu, ls


# --------------------------------- main ---------------------------------------

if __name__ == "__main__":
    key = jax.random.PRNGKey(0)
    kx, kp = jax.random.split(key)

    N = 200           # nodes (padded to 256 internally -> exercises the grid)
    IN_C = 8          # in_channels
    OUT_C = 4         # out_channels  (hidden = 2*OUT_C = 8)

    # node features
    x = jax.random.normal(kx, (N, IN_C), dtype=jnp.float32)

    # deterministic ring graph (undirected: both directions)
    src = jnp.arange(N, dtype=jnp.int32)
    dst = (src + 1) % N
    edge_index = jnp.stack([jnp.concatenate([src, dst]),
                            jnp.concatenate([dst, src])], axis=0)  # [2, 2N]
    edge_weight = None  # defaults to ones, as in the PyTorch module

    params = init_params(kp, IN_C, OUT_C)

    mu, logstd = variational_gcn_encoder(x, edge_index, params,
                                         edge_weight=edge_weight)
    jax.block_until_ready((mu, logstd))

    assert mu.shape == (N, OUT_C) and logstd.shape == (N, OUT_C)

    # Validate against an f32 pure-JAX reference (bf16 MXU inputs -> loose tol).
    adj_ref = build_norm_adj(edge_index, edge_weight, N)
    mu_ref, ls_ref = _reference(x, adj_ref, params)
    assert jnp.allclose(mu, mu_ref, atol=5e-2, rtol=5e-2)
    assert jnp.allclose(logstd, ls_ref, atol=5e-2, rtol=5e-2)

    print("KERNEL_OK")
</pallas_src>

<mosaic_0001>
module attributes {stable_mosaic.version = 11 : i64} {
  func.func @_adj_spmm_kernel(%arg0: i32, %arg1: i32, %arg2: memref<128x256xbf16, #tpu.memory_space<vmem>>, %arg3: memref<256x128xbf16, #tpu.memory_space<vmem>>, %arg4: memref<1x128xf32, #tpu.memory_space<vmem>>, %arg5: memref<128x128xbf16, #tpu.memory_space<vmem>>, %arg6: memref<128x128xf32, #tpu.memory_space<vmem>>) attributes {dimension_semantics = [#tpu.dimension_semantics<parallel>, #tpu.dimension_semantics<arbitrary>], iteration_bounds = array<i64: 2, 1>, scalar_prefetch = 0 : i64, scratch_operands = 1 : i64, tpu.core_type = #tpu.core_type<tc>, window_params = [{transform_indices = @transform_0, window_bounds = array<i64: 128, 256>}, {pipeline_mode = #tpu.pipeline_mode<synchronous>, transform_indices = @transform_1, window_bounds = array<i64: 256, 128>}, {pipeline_mode = #tpu.pipeline_mode<synchronous>, transform_indices = @transform_2, window_bounds = array<i64: 1, 128>}, {transform_indices = @transform_3, window_bounds = array<i64: 128, 128>}]} {
    %c0_i32 = arith.constant 0 : i32
    %0 = arith.cmpi eq, %arg1, %c0_i32 : i32
    %1 = arith.extui %0 : i1 to i32
    %c0_i32_0 = arith.constant 0 : i32
    %2 = arith.cmpi ne, %1, %c0_i32_0 : i32
    scf.if %2 {
      %cst_9 = arith.constant 0.000000e+00 : f32
      %15 = vector.broadcast %cst_9 : f32 to vector<128x128xf32>
      %c0_10 = arith.constant 0 : index
      %c0_11 = arith.constant 0 : index
      %16 = vector.load %arg6[%c0_10, %c0_11] : memref<128x128xf32, #tpu.memory_space<vmem>>, vector<128x128xf32>
      tpu.vector_store %arg6[%c0_10, %c0_11], %15 {strides = array<i32>} : memref<128x128xf32, #tpu.memory_space<vmem>>, vector<128x128xf32>,
    } else {
    }
    %c256_i32 = arith.constant 256 : i32
    %3 = arith.muli %arg1, %c256_i32 : i32
    %4 = tpu.assume_multiple %3, 256 : i32
    %5 = arith.index_cast %4 : i32 to index
    %c0 = arith.constant 0 : index
    %6 = vector.load %arg3[%5, %c0] : memref<256x128xbf16, #tpu.memory_space<vmem>>, vector<256x128xbf16>
    %c0_1 = arith.constant 0 : index
    %c0_2 = arith.constant 0 : index
    %7 = vector.load %arg6[%c0_1, %c0_2] : memref<128x128xf32, #tpu.memory_space<vmem>>, vector<128x128xf32>
    %c0_3 = arith.constant 0 : index
    %c0_4 = arith.constant 0 : index
    %8 = vector.load %arg2[%c0_3, %c0_4] : memref<128x256xbf16, #tpu.memory_space<vmem>>, vector<128x256xbf16>
    %cst = arith.constant dense<0.000000e+00> : vector<128x128xf32>
    %9 = tpu.matmul %8, %6, %cst {dimension_numbers = #tpu.dot_dimension_numbers<[1], [0], [0], [1], [0, 0, 1, 1], [], []>} : vector<128x256xbf16>, vector<256x128xbf16>, vector<128x128xf32> -> vector<128x128xf32>
    %10 = arith.addf %7, %9 : vector<128x128xf32>
    %c0_5 = arith.constant 0 : index
    %c0_6 = arith.constant 0 : index
    %11 = vector.load %arg6[%c0_5, %c0_6] : memref<128x128xf32, #tpu.memory_space<vmem>>, vector<128x128xf32>
    tpu.vector_store %arg6[%c0_5, %c0_6], %10 {strides = array<i32>} : memref<128x128xf32, #tpu.memory_space<vmem>>, vector<128x128xf32>,
    %c0_i32_7 = arith.constant 0 : i32
    %12 = arith.cmpi eq, %arg1, %c0_i32_7 : i32
    %13 = arith.extui %12 : i1 to i32
    %c0_i32_8 = arith.constant 0 : i32
    %14 = arith.cmpi ne, %13, %c0_i32_8 : i32
    scf.if %14 {
      %c0_9 = arith.constant 0 : index
      %c0_10 = arith.constant 0 : index
      %15 = vector.load %arg6[%c0_9, %c0_10] : memref<128x128xf32, #tpu.memory_space<vmem>>, vector<128x128xf32>
      %c0_11 = arith.constant 0 : index
      %c0_12 = arith.constant 0 : index
      %16 = vector.load %arg4[%c0_11, %c0_12] : memref<1x128xf32, #tpu.memory_space<vmem>>, vector<1x128xf32>
      %17 = vector.broadcast %16 : vector<1x128xf32> to vector<128x128xf32>
      %18 = arith.addf %15, %17 : vector<128x128xf32>
      %cst_13 = arith.constant 0.000000e+00 : f32
      %19 = vector.broadcast %cst_13 : f32 to vector<128x128xf32>
      %20 = arith.maximumf %18, %19 : vector<128x128xf32>
      %21 = arith.truncf %20 : vector<128x128xf32> to vector<128x128xbf16>
      %c0_14 = arith.constant 0 : index
      %c0_15 = arith.constant 0 : index
      %22 = vector.load %arg5[%c0_14, %c0_15] : memref<128x128xbf16, #tpu.memory_space<vmem>>, vector<128x128xbf16>
      tpu.vector_store %arg5[%c0_14, %c0_15], %21 {strides = array<i32>} : memref<128x128xbf16, #tpu.memory_space<vmem>>, vector<128x128xbf16>,
    } else {
    }
    return
  }
  func.func @transform_0(%arg0: i32, %arg1: i32) -> (i32, i32) {
    %c0_i32 = arith.constant 0 : i32
    return %arg0, %arg1 : i32, i32
  }
  func.func @transform_1(%arg0: i32, %arg1: i32) -> (i32, i32) {
    %c0_i32 = arith.constant 0 : i32
    %c0_i32_0 = arith.constant 0 : i32
    %c0_i32_1 = arith.constant 0 : i32
    return %c0_i32, %c0_i32_0 : i32, i32
  }
  func.func @transform_2(%arg0: i32, %arg1: i32) -> (i32, i32) {
    %c0_i32 = arith.constant 0 : i32
    %c0_i32_0 = arith.constant 0 : i32
    %c0_i32_1 = arith.constant 0 : i32
    return %c0_i32, %c0_i32_0 : i32, i32
  }
  func.func @transform_3(%arg0: i32, %arg1: i32) -> (i32, i32) {
    %c0_i32 = arith.constant 0 : i32
    %c0_i32_0 = arith.constant 0 : i32
    return %arg0, %c0_i32 : i32, i32
  }
}

</mosaic_0001>

<bundles_post_ra>
// kernel: tpu_custom_call.1
= control target key start
LH: loop header
LB: loop body
LE: loop exit
PB: predicated region body
PF: predicated region fallthrough
CT: control target
= control target key end

     0   :  { %s1537_s0 = inlined_call_operand.hbm [shape: bf16[256,256], index: 0, kind: input, shape index: {}]   ;;  %s1538_s1 = inlined_call_operand.hbm [shape: bf16[256,128], index: 1, kind: input, shape index: {}]   ;;  %s1539_s2 = inlined_call_operand.vmem [shape: f32[1,128], index: 2, kind: input, shape index: {}]   ;;  %s1540_s3 = inlined_call_operand.hbm [shape: bf16[256,128], index: 3, kind: output, shape index: {}]  }
   0x1   :  { %1541 = sst [smem:[#allocation12_spill]] %s1538_s1 }
   0x2   :  { %8 = vsyncpa [#allocation4], 0 }
   0x3   :  { %10 = vsyncpa [#allocation4 + $0x1], 0 }
   0x4   :  { %11 = vsyncpa [#allocation7], 0 }
   0x5   :  { %12 = vsyncpa [#allocation5], 0 }
   0x6   :  { %14 = vsyncpa [#allocation5 + $0x1], 0  ;;  %s1321_s12 = smov 0   ;;  %s1323_s13 = smov 0  }
   0x7   :  { %s1325_s14 = smov 0   ;;  %s1327_s15 = smov 0  }
   0x8   :  { %s1329_s16 = smov 0   ;;  %s1331_s17 = smov 0  }
   0x9 LB: > { %s822_s18 = sadd.s32 4294967295, %s1292_s17   ;;  %s823_s19 = sadd.s32 4294967294, %s1292_s17   ;;  %s1292_s17 = sphi %s1331_s17, %s20_s17   ;;  %s1288_s16 = sphi %s1329_s16, %s1554_s16   ;;  %s1284_s15 = sphi %s1327_s15, %s1553_s15   ;;  %s1280_s14 = sphi %s1325_s14, %s1552_s14   ;;  %s1276_s13 = sphi %s1323_s13, %s1551_s13   ;;  %s1272_s12 = sphi %s1321_s12, %s1550_s12  }
   0xa   : > { %p54_p0 = scmp.ne.s32.totalorder %s1276_s13, %s1272_s12  ;;  %p1355_p1 = scmp.eq.s32.totalorder %s822_s18, 0 }
   0xb   : > { %p1359_p2 = scmp.eq.s32.totalorder %s822_s18, 1  ;;  %p126_p3 = scmp.eq.s32.totalorder %s823_s19, 1 }
   0xc   : > { %p1365_p4 = por %p1355_p1, %p54_p0  ;;  %p824_p5 = scmp.ge.s32.totalorder %s1292_s17, 1 }
   0xd   : > { %p1370_p6 = por %p126_p3, %p54_p0  ;;  %p133_p7 = scmp.lt.s32.totalorder %s1292_s17, 3 }
   0xe   : > { %s1546_s1 = sld [smem:[#allocation12_spill]]  ;;  %s1294_s28 = smov [#allocation6]  }
   0xf   : > { %p1378_p8 = pnand %p824_p5, %p133_p7  ;;  %s146_s29 = sshll.u32 %s1294_s28, 4  ;;  %s147_s29 = int_to_ptr.vmem [resolvable:$true] %s146_s29 }
  0x10   : > { %p826_p11 = scmp.ge.s32.totalorder %s1292_s17, 2  ;;  %s1295_s30 = smov 64  }
  0x11   : > { %p1074_p9 = pneg %p1378_p8  ;;  %s1296_s4 = smov 4  }
  0x12   : > { %s32_s5 = sadd.s32 1, %s1288_s16  ;;  %s41_s6 = sadd.s32 1, %s1280_s14 }
  0x13   : > { %p1075_p10 = pnand %p1074_p9, %p1355_p1  ;;  %p34_p12 = scmp.ge.s32.totalorder %s32_s5, 2 }
  0x14   : > { %s144_s26 = sshll.u32 %s1546_s1, 4  ;;  %p48_p13 = scmp.ne.s32.totalorder %s1280_s14, %s1276_s13  ;;  %s145_s26 = int_to_ptr.hbm [resolvable:$true] %s144_s26 }
  0x15   : > { %1077 = dma.hbm_to_vmem [thread:$0]  (!%p1075_p10), %s145_s26, 2048, %s147_s29, [#allocation7], %s1295_s30, %s1295_s30, %s1296_s4  }
  0x16   : > { %p49_p0 = scmp.eq.s32.totalorder %s1292_s17, 0  ;;  %s1556_s5 = smov (%p34_p12, %s32_s5), 0 }
  0x17   : > { %p1400_p5 = por %p1359_p2, %p48_p13  ;;  %s36_s9 = ssub.s32 %s1288_s16, %s1556_s5 }
  0x18   : > { %p1394_p3 = por %p49_p0, %p48_p13  ;;  %p1087_p7 = scmp.lt.s32.totalorder %s1292_s17, 2 }
  0x19   : > { %p39_p9 = scmp.eq.s32.totalorder %s36_s9, 0  ;;  %s163_s10 = sand.u32 1, %s1280_s14  }
  0x1a   : > { %s827_s11 = sshll.u32 %s163_s10, 7  ;;  %s969_s19 = sshll.u32 %s1288_s16, 7 }
  0x1b   : > { %s1409_s18 = scalar_select %p39_p9, %s1280_s14, %s41_s6  }
  0x1c   : > { %s175_s26 = scalar_lea.hbm %s1537_s0, %s969_s19  ;;  %s167_s28 = scalar_lea.vmem [#allocation3], %s827_s11 }
  0x1d   : > { %s178_s29 = sshll.u32 %s167_s28, 4  ;;  %s176_s21 = sshll.u32 %s175_s26, 4  ;;  %s179_s29 = int_to_ptr.vmem [resolvable:$true] %s178_s29  ;;  %s177_s21 = int_to_ptr.hbm [resolvable:$true] %s176_s21 }
  0x1e   : > { %p1079_p2 = pnand %p1087_p7, %p1394_p3  ;;  %s164_s30 = scalar_lea.sflag [#allocation4], %s163_s10 }
  0x1f   : > { %s1297_s4 = smov 128   ;;  %s1298_s1 = smov 8  }
  0x20   : > { %1081 = dma.hbm_to_vmem [thread:$0]  (!%p1079_p2), %s177_s21, 2048, %s179_s29, %s164_s30, %s1297_s4, %s1297_s4, %s1298_s1  }
  0x21   : > { %190 = sbr.rel (%p1378_p8) target bundleno = 274 (0x112), region = 32  ;;  %s1420_s6 = sand.u32 (!%p1378_p8), 1, %s1276_s13  }
  0x22   : > { %s832_s9 = sshll.u32 (!%p1378_p8), %s1420_s6, 7  ;;  %s193_s11 = scalar_lea.sflag (!%p1378_p8), [#allocation4], %s1420_s6 }
  0x23   : > { %s1424_s19 = scalar_lea.vmem (!%p1378_p8), [#allocation3], %s832_s9 }
  0x26   : > { %1259 = dma.done.wait (%p1365_p4), %s193_s11, 2048  }
  0x27   : > { %1261 = vsyncadd (%p1365_p4), %s193_s11, 4294965248 }
  0x28   : > { %1263 = dma.done.wait (%p1355_p1), [#allocation7], 2048  }
  0x29   : > { %1265 = vsyncadd (%p1355_p1), [#allocation7], 4294965248  ;;  %v977_v0 = vld [vmem:[#allocation6 + $0x38] sm:$0xff]  ;;  %v976_v2 = vld [vmem:[#allocation6 + $0x30] sm:$0xff]  ;;  %s834_s22 = sshll.u32 %s1420_s6, 6  ;;  %s1002_s7 = sshll.u32 %s1284_s15, 6 }
  0x2a   : > { %v985_v1 = vld [vmem:[#allocation6 + $0x78] sm:$0xff]  ;;  %493 = vmatpush.bf16.msra.mxu0 %v977_v0  ;;  %1050 = vmatpush.bf16.msra.mxu2 %v977_v0  ;;  %v984_v3 = vld [vmem:[#allocation6 + $0x70] sm:$0xff]  ;;  %v975_v4 = vld [vmem:[#allocation6 + $0x28] sm:$0xff]  ;;  %s1475_s27 = scalar_lea.vmem [#allocation8], %s834_s22  ;;  %s722_s25 = scalar_lea.hbm %s1540_s3, %s1002_s7 }
  0x2b   : > { %542 = vmatpush.bf16.msra.mxu1 %v985_v1  ;;  %1058 = vmatpush.bf16.msra.mxu3 %v985_v1  ;;  %v983_v5 = vld [vmem:[#allocation6 + $0x68] sm:$0xff]  ;;  %v974_v6 = vld [vmem:[#allocation6 + $0x20] sm:$0xff]  ;;  %v973_v8 = vld [vmem:[#allocation6 + $0x18] sm:$0xff]  ;;  %s723_s26 = sshll.u32 %s1475_s27, 4  ;;  %s725_s15 = sshll.u32 %s722_s25, 4  ;;  %s724_s26 = int_to_ptr.vmem [resolvable:$true] %s723_s26  ;;  %s726_s15 = int_to_ptr.hbm [resolvable:$true] %s725_s15 }
  0x2c   : > { %v982_v7 = vld [vmem:[#allocation6 + $0x60] sm:$0xff]  ;;  %v981_v9 = vld [vmem:[#allocation6 + $0x58] sm:$0xff]  ;;  %v972_v10 = vld [vmem:[#allocation6 + $0x10] sm:$0xff]  ;;  %s711_s28 = scalar_lea.sflag [#allocation5], %s1420_s6  ;;  %s1220_s29 = sshra.s32 %s726_s15, 4  ;;  %s1221_s29 = int_to_ptr.hbm [resolvable:$true] %s1220_s29 }
  0x2d   : > { %v980_v11 = vld [vmem:[#allocation6 + $0x50] sm:$0xff]  ;;  %v971_v12 = vld [vmem:[#allocation6 + $0x8] sm:$0xff]  ;;  %v970_v14 = vld [vmem:[#allocation6] sm:$0xff]  ;;  %s1222_s21 = scalar_lea.hbm %s1221_s29, 64  ;;  %s1226_s9 = scalar_lea.hbm %s1540_s3, 128 }
  0x2e   : > { %494 = vmatpush.bf16.msra.mxu0 %v976_v2  ;;  %1051 = vmatpush.bf16.msra.mxu2 %v976_v2  ;;  %v979_v13 = vld [vmem:[#allocation6 + $0x48] sm:$0xff]  ;;  %v978_v15 = vld [vmem:[#allocation6 + $0x40] sm:$0xff]  ;;  %v845_v28 = vld [vmem:[%s1424_s19 + $0x10] sm:$0xf]  ;;  %p1223_p1 = scmp.ne.s32.totalorder %s1221_s29, %s1222_s21  ;;  %p1227_p10 = scmp.lt.s32.totalorder %s1221_s29, %s1540_s3 }
  0x2f   : > { %543 = vmatpush.bf16.msra.mxu1 %v984_v3  ;;  %1059 = vmatpush.bf16.msra.mxu3 %v984_v3  ;;  %v837_v16 = vld [vmem:[%s1424_s19] sm:$0xf]  ;;  %v987_v17 = vld [vmem:[%s1424_s19 + $0x4] sm:$0xf0]  ;;  %v986_v20 = vld [vmem:[%s1424_s19 + $0x4] sm:$0xf]  ;;  %p1228_p12 = scmp.lt.s32.totalorder %s1226_s9, %s1222_s21 }
  0x30   : > { %v869_v18 = vld [vmem:[%s1424_s19 + $0x40] sm:$0xf]  ;;  %v995_v19 = vld [vmem:[%s1424_s19 + $0x44] sm:$0xf0]  ;;  %v839_v21 = vld [vmem:[%s1424_s19 + $0x8] sm:$0xf0]  ;;  %v838_v24 = vor.u32 %v987_v17, %v837_v16  ;;  %p1224_p4 = pnand %p1223_p1, %p1400_p5 }
  0x31   : > { %v994_v22 = vld [vmem:[%s1424_s19 + $0x44] sm:$0xf]  ;;  %v871_v23 = vld [vmem:[%s1424_s19 + $0x48] sm:$0xf0]  ;;  %v870_v25 = vor.u32 %v995_v19, %v869_v18  ;;  %v842_v26 = vor.u32 %v986_v20, %v839_v21  ;;  %v989_v29 = vld [vmem:[%s1424_s19 + $0x14] sm:$0xf0]  ;;  %p1229_p13 = por %p1228_p12, %p1227_p10 }
  0x32   : > { %495 = vmatpush.bf16.msra.mxu0 %v975_v4  ;;  %1052 = vmatpush.bf16.msra.mxu2 %v975_v4  ;;  %v874_v27 = vor.u32 %v994_v22, %v871_v23  ;;  %v877_v30 = vld [vmem:[%s1424_s19 + $0x50] sm:$0xf]  ;;  %v997_v31 = vld [vmem:[%s1424_s19 + $0x54] sm:$0xf0]  ;;  %v988_v32 = vld [vmem:[%s1424_s19 + $0x14] sm:$0xf]  ;;  %v846_v36 = vor.u32 %v989_v29, %v845_v28  ;;  %p1225_p8 = pneg %p1224_p4 }
  0x33   : > { %544 = vmatpush.bf16.msra.mxu1 %v983_v5  ;;  %1060 = vmatpush.bf16.msra.mxu3 %v983_v5  ;;  %v847_v33 = vld [vmem:[%s1424_s19 + $0x18] sm:$0xf0]  ;;  %v996_v34 = vld [vmem:[%s1424_s19 + $0x54] sm:$0xf]  ;;  %v878_v37 = vor.u32 %v997_v31, %v877_v30  ;;  %v853_v40 = vld [vmem:[%s1424_s19 + $0x20] sm:$0xf] }
  0x34   : > { %v879_v35 = vld [vmem:[%s1424_s19 + $0x58] sm:$0xf0]  ;;  %v850_v38 = vor.u32 %v988_v32, %v847_v33  ;;  %v991_v41 = vld [vmem:[%s1424_s19 + $0x24] sm:$0xf0]  ;;  %v885_v42 = vld [vmem:[%s1424_s19 + $0x60] sm:$0xf]  ;;  %p1230_p0 = pnand %p1229_p13, %p1225_p8 }
  0x35   : > { %v882_v39 = vor.u32 %v996_v34, %v879_v35  ;;  %v999_v43 = vld [vmem:[%s1424_s19 + $0x64] sm:$0xf0]  ;;  %v990_v44 = vld [vmem:[%s1424_s19 + $0x24] sm:$0xf]  ;;  %v855_v45 = vld [vmem:[%s1424_s19 + $0x28] sm:$0xf0]  ;;  %v854_v48 = vor.u32 %v991_v41, %v853_v40 }
  0x36   : > { %496 = vmatpush.bf16.msra.mxu0 %v974_v6  ;;  %1053 = vmatpush.bf16.msra.mxu2 %v974_v6  ;;  %v998_v46 = vld [vmem:[%s1424_s19 + $0x64] sm:$0xf]  ;;  %v887_v47 = vld [vmem:[%s1424_s19 + $0x68] sm:$0xf0]  ;;  %v886_v49 = vor.u32 %v999_v43, %v885_v42  ;;  %v858_v50 = vor.u32 %v990_v44, %v855_v45  ;;  %v861_v52 = vld [vmem:[%s1424_s19 + $0x30] sm:$0xf] }
  0x37   : > { %545 = vmatpush.bf16.msra.mxu1 %v982_v7  ;;  %1061 = vmatpush.bf16.msra.mxu3 %v982_v7  ;;  %v890_v51 = vor.u32 %v998_v46, %v887_v47  ;;  %v993_v53 = vld [vmem:[%s1424_s19 + $0x34] sm:$0xf0]  ;;  %v893_v54 = vld [vmem:[%s1424_s19 + $0x70] sm:$0xf]  ;;  %v992_v56 = vld [vmem:[%s1424_s19 + $0x34] sm:$0xf] }
  0x38   : > { %v1001_v55 = vld [vmem:[%s1424_s19 + $0x74] sm:$0xf0]  ;;  %v863_v57 = vld [vmem:[%s1424_s19 + $0x38] sm:$0xf0]  ;;  %v1000_v58 = vld [vmem:[%s1424_s19 + $0x74] sm:$0xf]  ;;  %v862_v60 = vor.u32 %v993_v53, %v861_v52 }
  0x39   : > { %v895_v59 = vld [vmem:[%s1424_s19 + $0x78] sm:$0xf0]  ;;  %v894_v61 = vor.u32 %v1001_v55, %v893_v54  ;;  %v866_v62 = vor.u32 %v992_v56, %v863_v57  ;;  %v1469_v3 = vld [vmem:[%s1539_s2] ss:$0 sm:$0xff] }
  0x3a   : > { %497 = vmatpush.bf16.msra.mxu0 %v973_v8  ;;  %1054 = vmatpush.bf16.msra.mxu2 %v973_v8  ;;  %v898_v63 = vor.u32 %v1000_v58, %v895_v59 }
  0x3b   : > { %546 = vmatpush.bf16.msra.mxu1 %v981_v9  ;;  %1062 = vmatpush.bf16.msra.mxu3 %v981_v9 }
  0x3e   : > { %498 = vmatpush.bf16.msra.mxu0 %v972_v10  ;;  %1055 = vmatpush.bf16.msra.mxu2 %v972_v10 }
  0x3f   : > { %547 = vmatpush.bf16.msra.mxu1 %v980_v11  ;;  %1063 = vmatpush.bf16.msra.mxu3 %v980_v11 }
  0x42   : > { %499 = vmatpush.bf16.msra.mxu0 %v971_v12  ;;  %1056 = vmatpush.bf16.msra.mxu2 %v971_v12 }
  0x43   : > { %548 = vmatpush.bf16.msra.mxu1 %v979_v13  ;;  %1064 = vmatpush.bf16.msra.mxu3 %v979_v13 }
  0x46   : > { %500 = vmatpush.bf16.msra.mxu0 %v970_v14  ;;  %1057 = vmatpush.bf16.msra.mxu2 %v970_v14 }
  0x47   : > { %549 = vmatpush.bf16.msra.mxu1 %v978_v15  ;;  %1065 = vmatpush.bf16.msra.mxu3 %v978_v15 }
  0x49   : > { %501 = vmatmul.bf16.vlgmr.msra.gmra.mxu0 %v838_v24  ;;  %521 = vmatmul.bf16.vlgmr.msra.gmra.mxu2 %v870_v25 }
  0x4a   : > { %550 = vmatmul.bf16.vlgmr.msra.gmra.mxu1 %v842_v26  ;;  %570 = vmatmul.bf16.vlgmr.msra.gmra.mxu3 %v874_v27 }
  0x59   : > { %506 = vmatmul.bf16.gmra.mxu0 %v846_v36  ;;  %526 = vmatmul.bf16.gmra.mxu2 %v878_v37 }
  0x5a   : > { %555 = vmatmul.bf16.gmra.mxu1 %v850_v38  ;;  %575 = vmatmul.bf16.gmra.mxu3 %v882_v39 }
  0x69   : > { %511 = vmatmul.bf16.gmra.mxu0 %v854_v48  ;;  %531 = vmatmul.bf16.gmra.mxu2 %v886_v49 }
  0x6a   : > { %560 = vmatmul.bf16.gmra.mxu1 %v858_v50  ;;  %580 = vmatmul.bf16.gmra.mxu3 %v890_v51 }
  0x79   : > { %516 = vmatmul.bf16.gmra.mxu0 %v862_v60  ;;  %536 = vmatmul.bf16.gmra.mxu2 %v894_v61 }
  0x7a   : > { %565 = vmatmul.bf16.gmra.mxu1 %v866_v62  ;;  %585 = vmatmul.bf16.gmra.mxu3 %v898_v63 }
  0xc6   : > { %v502_v0 = vpop.f32.mrf.mxu0 }
  0xc7   : > { %v551_v1 = vpop.f32.mrf.mxu1 }
  0xc8   : > { %v552_v2 = vadd.f32 %v551_v1, %v502_v0 }
  0xca   : > { %v646_v8 = vadd.f32 %v1469_v3, %v552_v2 }
  0xcc   : > { %v522_v4 = vpop.f32.mrf.mxu2  ;;  %v662_v12 = vmax.f32 %v646_v8, 0.0 }
  0xcd   : > { %v571_v5 = vpop.f32.mrf.mxu3 }
  0xce   : > { %v504_v6 = vpop.f32.mrf.mxu0  ;;  %v572_v10 = vadd.f32 %v571_v5, %v522_v4 }
  0xcf   : > { %v553_v7 = vpop.f32.mrf.mxu1 }
  0xd0   : > { %v554_v9 = vadd.f32 %v553_v7, %v504_v6  ;;  %v654_v16 = vadd.f32 %v1469_v3, %v572_v10 }
  0xd2   : > { %v647_v11 = vadd.f32 %v1469_v3, %v554_v9  ;;  %v670_v22 = vmax.f32 %v654_v16, 0.0 }
  0xd4   : > { %v663_v13 = vmax.f32 %v647_v11, 0.0  ;;  %v524_v14 = vpop.f32.mrf.mxu2 }
  0xd5   : > { %v573_v15 = vpop.f32.mrf.mxu3 }
  0xd6   : > { %v1006_v17 = vpack.c.bf16 %v663_v13, %v662_v12  ;;  %v574_v18 = vadd.f32 %v573_v15, %v524_v14  ;;  %v507_v19 = vpop.f32.mrf.mxu0 }
  0xd7   : > { %v556_v20 = vpop.f32.mrf.mxu1 }
  0xd8   : > { %1007 = vst [vmem:[%s1475_s27] sm:$0xff] %v1006_v17   ;;  %v655_v21 = vadd.f32 %v1469_v3, %v574_v18  ;;  %v557_v25 = vadd.f32 %v556_v20, %v507_v19 }
  0xda   : > { %v671_v23 = vmax.f32 %v655_v21, 0.0  ;;  %v648_v30 = vadd.f32 %v1469_v3, %v557_v25 }
  0xdc   : > { %v1026_v24 = vpack.c.bf16 %v671_v23, %v670_v22  ;;  %v527_v26 = vpop.f32.mrf.mxu2  ;;  %v664_v34 = vmax.f32 %v648_v30, 0.0 }
  0xdd   : > { %v576_v27 = vpop.f32.mrf.mxu3 }
  0xde   : > { %1046 = vst [vmem:[%s1475_s27 + $0x20] sm:$0xff] %v1026_v24   ;;  %v509_v28 = vpop.f32.mrf.mxu0  ;;  %v577_v32 = vadd.f32 %v576_v27, %v527_v26 }
  0xdf   : > { %v558_v29 = vpop.f32.mrf.mxu1 }
  0xe0   : > { %v559_v31 = vadd.f32 %v558_v29, %v509_v28  ;;  %v656_v38 = vadd.f32 %v1469_v3, %v577_v32 }
  0xe2   : > { %v649_v33 = vadd.f32 %v1469_v3, %v559_v31  ;;  %v672_v44 = vmax.f32 %v656_v38, 0.0 }
  0xe4   : > { %v665_v35 = vmax.f32 %v649_v33, 0.0  ;;  %v529_v36 = vpop.f32.mrf.mxu2 }
  0xe5   : > { %v578_v37 = vpop.f32.mrf.mxu3 }
  0xe6   : > { %v1011_v39 = vpack.c.bf16 %v665_v35, %v664_v34  ;;  %v579_v40 = vadd.f32 %v578_v37, %v529_v36  ;;  %v512_v41 = vpop.f32.mrf.mxu0 }
  0xe7   : > { %v561_v42 = vpop.f32.mrf.mxu1 }
  0xe8   : > { %1043 = vst [vmem:[%s1475_s27 + $0x8] sm:$0xff] %v1011_v39   ;;  %v657_v43 = vadd.f32 %v1469_v3, %v579_v40  ;;  %v562_v47 = vadd.f32 %v561_v42, %v512_v41 }
  0xea   : > { %v673_v45 = vmax.f32 %v657_v43, 0.0  ;;  %v650_v52 = vadd.f32 %v1469_v3, %v562_v47 }
  0xec   : > { %v1031_v46 = vpack.c.bf16 %v673_v45, %v672_v44  ;;  %v532_v48 = vpop.f32.mrf.mxu2  ;;  %v666_v56 = vmax.f32 %v650_v52, 0.0 }
  0xed   : > { %v581_v49 = vpop.f32.mrf.mxu3 }
  0xee   : > { %1047 = vst [vmem:[%s1475_s27 + $0x28] sm:$0xff] %v1031_v46   ;;  %v514_v50 = vpop.f32.mrf.mxu0  ;;  %v582_v54 = vadd.f32 %v581_v49, %v532_v48 }
  0xef   : > { %v563_v51 = vpop.f32.mrf.mxu1 }
  0xf0   : > { %v564_v53 = vadd.f32 %v563_v51, %v514_v50  ;;  %v658_v60 = vadd.f32 %v1469_v3, %v582_v54 }
  0xf2   : > { %v651_v55 = vadd.f32 %v1469_v3, %v564_v53  ;;  %v674_v2 = vmax.f32 %v658_v60, 0.0 }
  0xf4   : > { %v667_v57 = vmax.f32 %v651_v55, 0.0  ;;  %v534_v58 = vpop.f32.mrf.mxu2 }
  0xf5   : > { %v583_v59 = vpop.f32.mrf.mxu3 }
  0xf6   : > { %v1016_v61 = vpack.c.bf16 %v667_v57, %v666_v56  ;;  %v584_v62 = vadd.f32 %v583_v59, %v534_v58  ;;  %v517_v63 = vpop.f32.mrf.mxu0 }
  0xf7   : > { %v566_v0 = vpop.f32.mrf.mxu1 }
  0xf8   : > { %1044 = vst [vmem:[%s1475_s27 + $0x10] sm:$0xff] %v1016_v61   ;;  %v659_v1 = vadd.f32 %v1469_v3, %v584_v62  ;;  %v567_v6 = vadd.f32 %v566_v0, %v517_v63 }
  0xfa   : > { %v675_v4 = vmax.f32 %v659_v1, 0.0  ;;  %v652_v11 = vadd.f32 %v1469_v3, %v567_v6 }
  0xfc   : > { %v1036_v5 = vpack.c.bf16 %v675_v4, %v674_v2  ;;  %v537_v7 = vpop.f32.mrf.mxu2  ;;  %v668_v15 = vmax.f32 %v652_v11, 0.0 }
  0xfd   : > { %v586_v8 = vpop.f32.mrf.mxu3 }
  0xfe   : > { %1048 = vst [vmem:[%s1475_s27 + $0x30] sm:$0xff] %v1036_v5   ;;  %v519_v9 = vpop.f32.mrf.mxu0  ;;  %v587_v13 = vadd.f32 %v586_v8, %v537_v7 }
  0xff   : > { %v568_v10 = vpop.f32.mrf.mxu1 }
 0x100   : > { %v569_v12 = vadd.f32 %v568_v10, %v519_v9  ;;  %v660_v19 = vadd.f32 %v1469_v3, %v587_v13 }
 0x102   : > { %v653_v14 = vadd.f32 %v1469_v3, %v569_v12  ;;  %v676_v23 = vmax.f32 %v660_v19, 0.0 }
 0x104   : > { %v669_v16 = vmax.f32 %v653_v14, 0.0  ;;  %v539_v17 = vpop.f32.mrf.mxu2 }
 0x105   : > { %v588_v18 = vpop.f32.mrf.mxu3 }
 0x106   : > { %v1021_v20 = vpack.c.bf16 %v669_v16, %v668_v15  ;;  %v589_v21 = vadd.f32 %v588_v18, %v539_v17 }
 0x108   : > { %1045 = vst [vmem:[%s1475_s27 + $0x18] sm:$0xff] %v1021_v20   ;;  %v661_v22 = vadd.f32 %v1469_v3, %v589_v21 }
 0x10a   : > { %v677_v24 = vmax.f32 %v661_v22, 0.0 }
 0x10c   : > { %v1041_v25 = vpack.c.bf16 %v677_v24, %v676_v23 }
 0x10e   : > { %1049 = vst [vmem:[%s1475_s27 + $0x38] sm:$0xff] %v1041_v25  }
 0x10f   : > { %1233 = shalt.err (!%p1230_p0)
}
 0x110   : > { %s1299_s6 = smov 64   ;;  %s1300_s1 = smov 4  }
 0x111   : > { %1072 = dma.vmem_to_hbm [thread:$0]  (%p1400_p5), %s724_s26, 1024, %s726_s15, %s711_s28, %s1299_s6, %s1299_s6, %s1300_s1  }
 0x112 PF: > { %s740_s20 = sand.u32 1, %s1272_s12   ;;  %p1083_p3 = pnand %p826_p11, %p1370_p6 }
 0x113   : > { %s741_s22 = scalar_lea.sflag [#allocation5], %s740_s20 }
 0x114   : > { %p1084_p7 = pneg %p1083_p3 }
 0x116   : > { %1267 = dma.done.wait (%p1084_p7), %s741_s22, 1024  }
 0x117   : > { %1269 = vsyncadd (%p1084_p7), %s741_s22, 4294966272  ;;  %s20_s17 = sadd.s32 1, %s1292_s17   ;;  %s1550_s12 = smov %s1276_s13 }
 0x118   : > { %p17_p9 = scmp.ge.s32.totalorder %s20_s17, 4   ;;  %s1551_s13 = smov %s1280_s14 }
 0x119   : > { %s1552_s14 = smov %s1409_s18  ;;  %s1553_s15 = smov %s1288_s16 }
 0x11a   : > { %s1554_s16 = smov %s1556_s5  ;;  %19 = sbr.rel (!%p17_p9) target bundleno = 9 (0x9), region = 90 }
 0x11f   :  { %747 = vsyncpa [#allocation4], 1 }
 0x120   :  { %749 = vsyncpa [#allocation4 + $0x1], 1 }
 0x121   :  { %750 = vsyncpa [#allocation7], 1 }
 0x122   :  { %751 = vsyncpa [#allocation5], 1 }
 0x123   :  { %753 = vsyncpa [#allocation5 + $0x1], 1 }

</bundles_post_ra>
